<compile_context>
chip_gen: v7x
topology: tpu7x:2x2x1
jax: 0.10.0
libtpu: 0.0.40
codegen_flags: <defaults>
</compile_context>

<pallas_src>
import functools

import jax
import jax.numpy as jnp
from jax.experimental import pallas as pl
from jax.experimental.pallas import tpu as pltpu

# ----------------------------- KAN constants -------------------------------
G = 8                                    # number of RBF grid points (FastKAN)
GRID_MIN, GRID_MAX = -2.0, 2.0
RBF_GRID = tuple(GRID_MIN + i * (GRID_MAX - GRID_MIN) / (G - 1) for i in range(G))
RBF_DENOM = (GRID_MAX - GRID_MIN) / (G - 1)


def _round_up(v, d):
    return ((v + d - 1) // d) * d


# ------------------------- generation-aware knobs ---------------------------
@functools.lru_cache(maxsize=None)
def _vmem_limit_bytes():
    try:
        cap = int(pltpu.get_tpu_info().vmem_capacity_bytes)
    except Exception:
        cap = 64 * 1024 * 1024
    # 3/4 of physical VMEM: ~48 MiB on v7x (64 MiB), ~96 MiB on v5e/v6e (128 MiB).
    return max(32 * 1024 * 1024, (cap * 3) // 4)


@functools.lru_cache(maxsize=None)
def _old_gen():
    # v5e and older: no bf16 VPU/EUP, 128-wide MXU N tile.
    try:
        kind = jax.devices()[0].device_kind.lower()
    except Exception:
        return False
    return any(t in kind for t in ("v2", "v3", "v4", "v5"))


def _ew_dtype():
    return jnp.float32 if _old_gen() else jnp.bfloat16


def _choose_ct(cp, kan):
    # KAN weight block is (1+G)*T planes -> keep it at 128 so the (double
    # buffered) weight tile never blows v7x's VMEM; v5e MXU is 128-wide anyway.
    if kan or _old_gen() or cp % 256 != 0:
        return 128
    return 256


def _choose_mt(m, f):
    # Large M tiles for the memory-bound 1x1 GEMMs; smaller when the KAN
    # feature expansion (f = 1+G) multiplies the elementwise temporaries.
    cap = 2048 if f == 1 else 512
    if m <= cap:
        return _round_up(m, 256)          # bf16 sublane packing + MXU alignment
    return cap


def _choose_th(h, w, cinp, n_feats, pad):
    # Row-tile so that the n_feats feature slabs (th+2p, w+2p, cinp) bf16 fit a
    # small per-step budget; th must divide h (halo slabs tile output rows).
    per_row = (w + 2 * pad) * cinp * 2
    budget = 4 * 1024 * 1024
    max_rows = max(1, budget // max(1, per_row * n_feats) - 2 * pad)
    th = min(h, max_rows)
    while th > 1 and h % th != 0:
        th -= 1
    return max(th, 1)


# ------------------------------ Pallas kernels ------------------------------
def _gemm_conv_kernel(*refs, kan, has_bias, has_res, post_silu, ew_dtype):
    """1x1 conv tile: folded GEMM on a flattened (Mt, Cinp) activation block.

    Ref order (static flags drive which are present):
      x_ref : (1, Mt, Cinp) bf16    w_ref : (F, Cinp, Ct) bf16
      b_ref : (1, Ct) f32           r_ref : (1, Mt, Ct) bf16
      o_ref : (1, Mt, Ct)
    """
    refs = list(refs)
    x_ref = refs.pop(0)
    w_ref = refs.pop(0)
    b_ref = refs.pop(0) if has_bias else None
    r_ref = refs.pop(0) if has_res else None
    o_ref = refs.pop(0)

    x = x_ref[0]                                            # (Mt, Cinp) bf16
    if kan:
        xe = x.astype(ew_dtype)                             # bf16 EW on v6e/v7x
        base = (xe * jax.nn.sigmoid(xe)).astype(jnp.bfloat16)
        acc = jnp.dot(base, w_ref[0], preferred_element_type=jnp.float32)
        z = xe * (1.0 / RBF_DENOM)                          # hoisted invariant
        for gi in range(G):
            d = z - (RBF_GRID[gi] / RBF_DENOM)
            phi = jnp.exp(-(d * d)).astype(jnp.bfloat16)
            acc = acc + jnp.dot(phi, w_ref[1 + gi],
                                preferred_element_type=jnp.float32)
    else:
        acc = jnp.dot(x, w_ref[0], preferred_element_type=jnp.float32)

    if has_bias:
        acc = acc + b_ref[...].astype(jnp.float32)          # (1, Ct) broadcast
    if post_silu:
        acc = acc * jax.nn.sigmoid(acc)                     # Conv's SiLU
    if has_res:
        acc = acc + r_ref[0].astype(jnp.float32)            # fused shortcut
    o_ref[0] = acc.astype(o_ref.dtype)


def _halo_conv_kernel(*refs, ksize, kan, has_bias, has_res, post_silu, th,
                      ew_dtype):
    """3x3 conv tile with in-kernel halo DMA and unexpanded-Cin elementwise.

    Ref order (static flags drive which are present):
      x_any : (N, H+2p, W+2p, Cinp) bf16, memory_space=pl.ANY (raw slab)
      w_ref : (F*T, Cinp, Ct) bf16, plane order [feature, tap] (tap = di*k+dj)
      b_ref : (1, Ct) f32           r_ref : (1, th, W, Ct) bf16
      o_ref : (1, th, W, Ct)
      xbuf  : VMEM (th+2p, W+2p, Cinp) scratch     sem : DMA semaphore (1,)
    """
    refs = list(refs)
    x_any = refs.pop(0)
    w_ref = refs.pop(0)
    b_ref = refs.pop(0) if has_bias else None
    r_ref = refs.pop(0) if has_res else None
    o_ref = refs.pop(0)
    xbuf = refs.pop(0)
    sem = refs.pop(0)

    b = pl.program_id(0)
    ri = pl.program_id(2)
    pad = ksize // 2
    thp = th + 2 * pad
    wout = o_ref.shape[2]
    cinp = xbuf.shape[-1]
    ct = o_ref.shape[-1]

    # Halo slab DMA: rows [ri*th, ri*th + th + 2p) of the zero-padded image.
    r0 = pl.multiple_of(ri * th, th)
    cpy = pltpu.make_async_copy(x_any.at[b, pl.ds(r0, thp)], xbuf, sem.at[0])
    cpy.start()
    cpy.wait()
    # TODO(synk): double-buffer the slab (prefetch ri+1) to hide this DMA.

    xs = xbuf[...]                                          # (thp, W+2p, Cinp)

    # Features computed ONCE on the unexpanded-Cin slab (not per tap).
    if kan:
        xe = xs.astype(ew_dtype)
        feats = [(xe * jax.nn.sigmoid(xe)).astype(jnp.bfloat16)]   # base branch
        z = xe * (1.0 / RBF_DENOM)                          # hoisted invariant
        for gi in range(G):
            d = z - (RBF_GRID[gi] / RBF_DENOM)
            feats.append(jnp.exp(-(d * d)).astype(jnp.bfloat16))
    else:
        feats = [xs]

    # 3x3 as 9 shifted K=Cinp MXU dots per feature (zero halo == 'same' pad).
    acc = jnp.zeros((th * wout, ct), jnp.float32)
    t = 0
    for feat in feats:
        for di in range(ksize):
            for dj in range(ksize):
                win = feat[di:di + th, dj:dj + wout, :].reshape(th * wout, cinp)
                acc = acc + jnp.dot(win, w_ref[t],
                                    preferred_element_type=jnp.float32)
                t += 1

    if has_bias:
        acc = acc + b_ref[...].astype(jnp.float32)
    if post_silu:
        acc = acc * jax.nn.sigmoid(acc)
    if has_res:
        acc = acc + r_ref[0].reshape(th * wout, ct).astype(jnp.float32)
    o_ref[0] = acc.reshape(th, wout, ct).astype(o_ref.dtype)


# ------------------------------ JAX wrappers --------------------------------
def _conv_1x1(x_nhwc, p, residual=None, out_dtype=jnp.bfloat16):
    n, h, w, cin = x_nhwc.shape
    wq = p["w"]                                   # (F, Cinp, Cp)
    f, cinp, cp = wq.shape
    cout = p["cout"]
    m = h * w

    x = x_nhwc.astype(jnp.bfloat16).reshape(n, m, cin)
    if cinp != cin:
        x = jnp.pad(x, ((0, 0), (0, 0), (0, cinp - cin)))   # lane-dense K
    mt = _choose_mt(m, f)
    mp = _round_up(m, mt)
    if mp != m:
        x = jnp.pad(x, ((0, 0), (0, mp - m), (0, 0)))
    ct = _choose_ct(cp, p["kan"])

    args = [x, wq]
    in_specs = [
        pl.BlockSpec((1, mt, cinp), lambda b, ci, mi: (b, mi, 0)),
        pl.BlockSpec((f, cinp, ct), lambda b, ci, mi: (0, 0, ci)),
    ]
    has_bias = p["b"] is not None
    if has_bias:
        args.append(p["b"])
        in_specs.append(pl.BlockSpec((1, ct), lambda b, ci, mi: (0, ci)))
    has_res = residual is not None
    if has_res:
        res = residual.astype(jnp.bfloat16).reshape(n, m, -1)
        res = jnp.pad(res, ((0, 0), (0, mp - m), (0, cp - res.shape[-1])))
        args.append(res)
        in_specs.append(pl.BlockSpec((1, mt, ct), lambda b, ci, mi: (b, mi, ci)))

    kern = functools.partial(_gemm_conv_kernel, kan=p["kan"], has_bias=has_bias,
                             has_res=has_res, post_silu=p["post_silu"],
                             ew_dtype=_ew_dtype())
    out = pl.pallas_call(
        kern,
        out_shape=jax.ShapeDtypeStruct((n, mp, cp), out_dtype),
        grid_spec=pltpu.PrefetchScalarGridSpec(
            num_scalar_prefetch=0,
            grid=(n, cp // ct, mp // mt),         # M innermost: weights reused
            in_specs=in_specs,
            out_specs=pl.BlockSpec((1, mt, ct), lambda b, ci, mi: (b, mi, ci)),
        ),
        compiler_params=pltpu.CompilerParams(
            # innermost axis "arbitrary": megacore split lands on batch/Cout.
            dimension_semantics=("parallel", "parallel", "arbitrary"),
            vmem_limit_bytes=_vmem_limit_bytes(),
        ),
    )(*args)
    return out[:, :m, :cout].reshape(n, h, w, cout)


def _conv_kxk(x_nhwc, p, residual=None, out_dtype=jnp.bfloat16):
    n, h, w, cin = x_nhwc.shape
    wq = p["w"]                                   # (F*T, Cinp, Cp)
    k = p["k"]
    pad = k // 2
    f = (1 + G) if p["kan"] else 1
    ft, cinp, cp = wq.shape
    assert ft == f * k * k
    cout = p["cout"]

    # Single cheap zero-pad (spatial halo + channel pad) -- no im2col in HBM.
    x = x_nhwc.astype(jnp.bfloat16)
    x = jnp.pad(x, ((0, 0), (pad, pad), (pad, pad), (0, cinp - cin)))
    th = _choose_th(h, w, cinp, f, pad)
    ct = _choose_ct(cp, p["kan"])

    args = [x, wq]
    in_specs = [
        pl.BlockSpec(memory_space=pl.ANY),        # halo slabs DMA'd in-kernel
        pl.BlockSpec((ft, cinp, ct), lambda b, ci, ri: (0, 0, ci)),
    ]
    has_bias = p["b"] is not None
    if has_bias:
        args.append(p["b"])
        in_specs.append(pl.BlockSpec((1, ct), lambda b, ci, ri: (0, ci)))
    has_res = residual is not None
    if has_res:
        res = residual.astype(jnp.bfloat16)
        res = jnp.pad(res, ((0, 0), (0, 0), (0, 0), (0, cp - res.shape[-1])))
        args.append(res)
        in_specs.append(
            pl.BlockSpec((1, th, w, ct), lambda b, ci, ri: (b, ri, 0, ci)))

    kern = functools.partial(_halo_conv_kernel, ksize=k, kan=p["kan"],
                             has_bias=has_bias, has_res=has_res,
                             post_silu=p["post_silu"], th=th,
                             ew_dtype=_ew_dtype())
    out = pl.pallas_call(
        kern,
        out_shape=jax.ShapeDtypeStruct((n, h, w, cp), out_dtype),
        grid_spec=pltpu.PrefetchScalarGridSpec(
            num_scalar_prefetch=0,
            grid=(n, cp // ct, h // th),          # row tiles innermost
            in_specs=in_specs,
            out_specs=pl.BlockSpec((1, th, w, ct),
                                   lambda b, ci, ri: (b, ri, 0, ci)),
            scratch_shapes=[
                pltpu.VMEM((th + 2 * pad, w + 2 * pad, cinp), jnp.bfloat16),
                pltpu.SemaphoreType.DMA((1,)),
            ],
        ),
        compiler_params=pltpu.CompilerParams(
            dimension_semantics=("parallel", "parallel", "arbitrary"),
            vmem_limit_bytes=_vmem_limit_bytes(),
        ),
    )(*args)
    return out[..., :cout]


def apply_conv(p, x_nhwc, residual=None, out_dtype=jnp.bfloat16):
    if p["k"] == 1:
        return _conv_1x1(x_nhwc, p, residual=residual, out_dtype=out_dtype)
    return _conv_kxk(x_nhwc, p, residual=residual, out_dtype=out_dtype)


# ---------------------------- parameter builders ----------------------------
def init_std_conv(key, cin, cout, ksize):
    """Standard Conv: bias-free Conv2d + folded BatchNorm + SiLU.

    Weight layout: (T, Cinp, Cp) with T = ksize**2 taps (tap = di*k + dj);
    Cin/Cout zero-padded to multiples of 128 (zero rows/cols are neutral).
    """
    t = ksize * ksize
    cinp = _round_up(cin, 128)
    cp = _round_up(cout, 128)
    kw, kb = jax.random.split(key)
    wf = jax.random.normal(kw, (t, cin, cout), jnp.float32)
    wf = wf * (2.0 / (t * cin)) ** 0.5                       # BN scale folded
    wf = jnp.pad(wf, ((0, 0), (0, cinp - cin), (0, cp - cout))).astype(jnp.bfloat16)
    b = jax.random.normal(kb, (1, cout), jnp.float32) * 0.01  # BN shift folded
    b = jnp.pad(b, ((0, 0), (0, cp - cout)))
    return dict(w=wf, b=b, k=ksize, kan=False, post_silu=True, cout=cout)


def init_kan_conv(key, cin, cout, ksize):
    """FastKAN conv: base_conv(SiLU(x)) + spline_conv(RBF(x)); no bias/act.

    Weight layout: ((1+G)*T, Cinp, Cp), plane order [feature, tap] with
    feature 0 = base (SiLU) branch and features 1..G the RBF grid points.
    """
    t = ksize * ksize
    cinp = _round_up(cin, 128)
    cp = _round_up(cout, 128)
    k0, k1 = jax.random.split(key)
    wb = jax.random.normal(k0, (t, cin, cout), jnp.float32) * (2.0 / (t * cin)) ** 0.5
    ws = jax.random.normal(k1, (G * t, cin, cout), jnp.float32) * (1.0 / (t * cin * G)) ** 0.5
    wf = jnp.concatenate([wb, ws], axis=0)                   # ((1+G)*T, Cin, Cout)
    wf = jnp.pad(wf, ((0, 0), (0, cinp - cin), (0, cp - cout))).astype(jnp.bfloat16)
    return dict(w=wf, b=None, k=ksize, kan=True, post_silu=False, cout=cout)


# --------------------------------- module -----------------------------------
class C2fPallas:
    """Pallas port of divan C2f (CSP bottleneck with 2 convolutions).

    `use_kan_conv=True` models the injected `_conv` constructor as a FastKAN
    conv; the module's replace_mode logic decides where it is used
    (replace_mode=0: only each Bottleneck's cv2 is the injected conv).
    """

    def __init__(self, c1, c2, n=1, use_kan_conv=True, shortcut=False,
                 replace_mode=0, g=1, e=0.5, key=jax.random.PRNGKey(0)):
        assert 0 <= replace_mode <= 2
        if g != 1:
            # TODO(synk): grouped convolutions (g > 1) not implemented.
            raise NotImplementedError("only g=1 is supported")
        self.c = int(c2 * e)
        self.add = bool(shortcut)          # bottleneck c1 == c2 == self.c here

        def ctor(use_injected):
            return init_kan_conv if (use_kan_conv and use_injected) else init_std_conv

        keys = jax.random.split(key, 2 + 2 * n)
        # C2f.cv1 / cv2 use the injected conv only when replace_mode >= 2.
        self.cv1 = ctor(replace_mode >= 2)(keys[0], c1, 2 * self.c, 1)
        self.cv2 = ctor(replace_mode >= 2)(keys[1], (2 + n) * self.c, c2, 1)
        # Bottlenecks: cv1 injected iff replace_mode >= 1, cv2 always injected.
        self.blocks = []
        for i in range(n):
            b1 = ctor(replace_mode >= 1)(keys[2 + 2 * i], self.c, self.c, 3)
            b2 = ctor(True)(keys[3 + 2 * i], self.c, self.c, 3)
            self.blocks.append((b1, b2))

    def __call__(self, x_nchw):
        # layout: accept NCHW (PyTorch), compute in NHWC/bf16, return NCHW f32.
        x = jnp.transpose(x_nchw, (0, 2, 3, 1))                 # N,H,W,C
        y = apply_conv(self.cv1, x)                             # (N,H,W,2c)
        y0, y1 = jnp.split(y, 2, axis=-1)                       # chunk(2, C)
        ys = [y0, y1]
        for b1, b2 in self.blocks:
            h_in = ys[-1]
            t = apply_conv(b1, h_in)                            # bottleneck cv1
            res = h_in if self.add else None                    # fused shortcut
            ys.append(apply_conv(b2, t, residual=res))          # bottleneck cv2
        # TODO(synk): write producers straight into a preallocated concat
        #             buffer (channel-offset out_specs / input_output_aliases).
        cat = jnp.concatenate(ys, axis=-1)                      # (N,H,W,(2+n)c)
        out = apply_conv(self.cv2, cat, out_dtype=jnp.float32)  # final 1x1 conv
        return jnp.transpose(out, (0, 3, 1, 2))                 # back to NCHW


if __name__ == "__main__":
    key = jax.random.PRNGKey(0)
    kx, kp = jax.random.split(key)

    N, C1, C2, H, W = 2, 4, 4, 16, 16
    x = jax.random.normal(kx, (N, C1, H, W), jnp.float32)

    block = C2fPallas(C1, C2, n=1, use_kan_conv=True, shortcut=True,
                      replace_mode=0, g=1, e=0.5, key=kp)
    y = block(x)
    jax.block_until_ready(y)

    assert y.shape == (N, C2, H, W), y.shape
    assert bool(jnp.all(jnp.isfinite(y)))
    print("KERNEL_OK")
</pallas_src>

<mosaic_0001>
module attributes {stable_mosaic.version = 11 : i64} {
  func.func @_gemm_conv_kernel(%arg0: i32, %arg1: i32, %arg2: i32, %arg3: memref<1x256x128xbf16, #tpu.memory_space<vmem>>, %arg4: memref<1x128x128xbf16, #tpu.memory_space<vmem>>, %arg5: memref<1x128xf32, #tpu.memory_space<vmem>>, %arg6: memref<1x256x128xbf16, #tpu.memory_space<vmem>>) attributes {dimension_semantics = [#tpu.dimension_semantics<parallel>, #tpu.dimension_semantics<parallel>, #tpu.dimension_semantics<arbitrary>], iteration_bounds = array<i64: 2, 1, 1>, scalar_prefetch = 0 : i64, scratch_operands = 0 : i64, tpu.core_type = #tpu.core_type<tc>, window_params = [{transform_indices = @transform_0, window_bounds = array<i64: 1, 256, 128>}, {transform_indices = @transform_1, window_bounds = array<i64: 1, 128, 128>}, {transform_indices = @transform_2, window_bounds = array<i64: 1, 128>}, {transform_indices = @transform_3, window_bounds = array<i64: 1, 256, 128>}]} {
    %c0 = arith.constant 0 : index
    %c0_0 = arith.constant 0 : index
    %c0_1 = arith.constant 0 : index
    %0 = vector.load %arg3[%c0, %c0_0, %c0_1] : memref<1x256x128xbf16, #tpu.memory_space<vmem>>, vector<1x256x128xbf16>
    %1 = vector.shape_cast %0 : vector<1x256x128xbf16> to vector<256x128xbf16>
    %c0_2 = arith.constant 0 : index
    %c0_3 = arith.constant 0 : index
    %c0_4 = arith.constant 0 : index
    %2 = vector.load %arg4[%c0_2, %c0_3, %c0_4] : memref<1x128x128xbf16, #tpu.memory_space<vmem>>, vector<1x128x128xbf16>
    %3 = vector.shape_cast %2 : vector<1x128x128xbf16> to vector<128x128xbf16>
    %cst = arith.constant dense<0.000000e+00> : vector<256x128xf32>
    %4 = tpu.matmul %1, %3, %cst {dimension_numbers = #tpu.dot_dimension_numbers<[1], [0], [0], [1], [0, 0, 1, 1], [], []>} : vector<256x128xbf16>, vector<128x128xbf16>, vector<256x128xf32> -> vector<256x128xf32>
    %c0_5 = arith.constant 0 : index
    %c0_6 = arith.constant 0 : index
    %5 = vector.load %arg5[%c0_5, %c0_6] : memref<1x128xf32, #tpu.memory_space<vmem>>, vector<1x128xf32>
    %6 = vector.broadcast %5 : vector<1x128xf32> to vector<256x128xf32>
    %7 = arith.addf %4, %6 : vector<256x128xf32>
    %8 = arith.negf %7 : vector<256x128xf32>
    %9 = math.exp %8 : vector<256x128xf32>
    %cst_7 = arith.constant 1.000000e+00 : f32
    %10 = vector.broadcast %cst_7 : f32 to vector<256x128xf32>
    %11 = arith.addf %10, %9 : vector<256x128xf32>
    %12 = arith.divf %10, %11 : vector<256x128xf32>
    %13 = arith.mulf %7, %12 : vector<256x128xf32>
    %14 = arith.truncf %13 : vector<256x128xf32> to vector<256x128xbf16>
    %c0_8 = arith.constant 0 : index
    %c0_9 = arith.constant 0 : index
    %c0_10 = arith.constant 0 : index
    %15 = vector.load %arg6[%c0_8, %c0_9, %c0_10] : memref<1x256x128xbf16, #tpu.memory_space<vmem>>, vector<1x256x128xbf16>
    %16 = vector.shape_cast %15 : vector<1x256x128xbf16> to vector<256x128xbf16>
    %17 = vector.shape_cast %14 : vector<256x128xbf16> to vector<1x256x128xbf16>
    tpu.vector_store %arg6[%c0_8, %c0_9, %c0_10], %17 {strides = array<i32>} : memref<1x256x128xbf16, #tpu.memory_space<vmem>>, vector<1x256x128xbf16>,
    return
  }
  func.func @transform_0(%arg0: i32, %arg1: i32, %arg2: i32) -> (i32, i32, i32) {
    %c0_i32 = arith.constant 0 : i32
    %c0_i32_0 = arith.constant 0 : i32
    return %arg0, %arg2, %c0_i32 : i32, i32, i32
  }
  func.func @transform_1(%arg0: i32, %arg1: i32, %arg2: i32) -> (i32, i32, i32) {
    %c0_i32 = arith.constant 0 : i32
    %c0_i32_0 = arith.constant 0 : i32
    %c0_i32_1 = arith.constant 0 : i32
    return %c0_i32, %c0_i32_0, %arg1 : i32, i32, i32
  }
  func.func @transform_2(%arg0: i32, %arg1: i32, %arg2: i32) -> (i32, i32) {
    %c0_i32 = arith.constant 0 : i32
    %c0_i32_0 = arith.constant 0 : i32
    return %c0_i32, %arg1 : i32, i32
  }
  func.func @transform_3(%arg0: i32, %arg1: i32, %arg2: i32) -> (i32, i32, i32) {
    %c0_i32 = arith.constant 0 : i32
    return %arg0, %arg2, %arg1 : i32, i32, i32
  }
}

</mosaic_0001>

<bundles_post_ra>
// kernel: tpu_custom_call.1
= control target key start
LH: loop header
LB: loop body
LE: loop exit
PB: predicated region body
PF: predicated region fallthrough
CT: control target
= control target key end

     0   :  { %8 = vsyncpa [#allocation3], 0  ;;  %s2315_s0 = inlined_call_operand.hbm [shape: bf16[2,256,128], index: 0, kind: input, shape index: {}]   ;;  %s2316_s1 = inlined_call_operand.hbm [shape: bf16[1,128,128], index: 1, kind: input, shape index: {}]   ;;  %s2317_s2 = inlined_call_operand.vmem [shape: f32[1,128], index: 2, kind: input, shape index: {}]   ;;  %s2318_s3 = inlined_call_operand.hbm [shape: bf16[2,256,128], index: 3, kind: output, shape index: {}]  }
   0x1   :  { %10 = vsyncpa [#allocation3 + $0x1], 0 }
   0x2   :  { %11 = vsyncpa [#allocation6], 0 }
   0x3   :  { %12 = vsyncpa [#allocation4], 0 }
   0x4   :  { %14 = vsyncpa [#allocation4 + $0x1], 0  ;;  %s1857_s12 = smov 0   ;;  %s1859_s13 = smov 0  }
   0x5   :  { %s1861_s14 = smov 0   ;;  %s1863_s15 = smov 0  }
   0x6   :  { %s1865_s16 = smov 0   ;;  %s1867_s17 = smov 0  }
   0x7 LB: > { %s1131_s18 = sadd.s32 4294967295, %s1828_s17   ;;  %s1132_s19 = sadd.s32 4294967294, %s1828_s17   ;;  %s1828_s17 = sphi %s1867_s17, %s20_s17   ;;  %s1824_s16 = sphi %s1865_s16, %s2342_s16   ;;  %s1820_s15 = sphi %s1863_s15, %s2341_s15   ;;  %s1816_s14 = sphi %s1861_s14, %s2340_s14   ;;  %s1812_s13 = sphi %s1859_s13, %s2339_s13   ;;  %s1808_s12 = sphi %s1857_s12, %s2338_s12  }
   0x8   : > { %p61_p0 = scmp.ne.s32.totalorder %s1812_s13, %s1808_s12  ;;  %p1891_p1 = scmp.eq.s32.totalorder %s1131_s18, 0 }
   0x9   : > { %p1895_p2 = scmp.eq.s32.totalorder %s1131_s18, 1  ;;  %p147_p3 = scmp.eq.s32.totalorder %s1132_s19, 1 }
   0xa   : > { %s2323_s20 = scalar_select %p1891_p1, 1, 0 }
   0xb   : > { %s2324_s21 = scalar_select %p1895_p2, 1, 0 }
   0xc   : > { %p1901_p4 = por %p1891_p1, %p61_p0  ;;  %p1133_p5 = scmp.ge.s32.totalorder %s1828_s17, 1 }
   0xd   : > { %p1906_p6 = por %p147_p3, %p61_p0  ;;  %p154_p7 = scmp.lt.s32.totalorder %s1828_s17, 3 }
   0xe   : > { %s2325_s22 = scalar_select %p1901_p4, 1, 0 }
   0xf   : > { %s2326_s23 = scalar_select %p1906_p6, 1, 0 }
  0x10   : > { %p1911_p8 = pnand %p1133_p5, %p154_p7  ;;  %s1830_s25 = smov [#allocation5]  }
  0x11   : > { %s168_s26 = sshll.u32 %s1830_s25, 4  ;;  %s39_s28 = sadd.s32 1, %s1824_s16  ;;  %s169_s26 = int_to_ptr.vmem [resolvable:$true] %s168_s26 }
  0x12   : > { %s2327_s24 = scalar_select %p1911_p8, 1, 0 }
  0x13   : > { %p1463_p9 = pneg %p1911_p8  ;;  %s1684_s4 = scalar_lea.hbm %s2316_s1, 1024 }
  0x14   : > { %p1685_p12 = scmp.ne.s32.totalorder %s2316_s1, %s1684_s4  ;;  %p1691_p5 = scmp.lt.u32.totalorder %s1684_s4, %s2316_s1 }
  0x15   : > { %p1920_p11 = pnand %p1463_p9, %p1891_p1 }
  0x17   : > { %p1686_p13 = pneg %p1920_p11 }
  0x19   : > { %p1687_p0 = pnand %p1686_p13, %p1685_p12 }
  0x1b   : > { %p1688_p3 = pneg %p1687_p0 }
  0x1d   : > { %p1693_p7 = pnand %p1691_p5, %p1688_p3 }
  0x1f   : > { %1696 = shalt.err (!%p1693_p7)
}
  0x20   : > { %s1697_s9 = scalar_lea.vmem %s169_s26, 1024  ;;  %p1705_p1 = scmp.lt.s32.totalorder %s169_s26, %s169_s26 }
  0x21   : > { %p1698_p9 = scmp.ne.s32.totalorder %s169_s26, %s1697_s9  ;;  %p1706_p4 = scmp.lt.s32.totalorder %s1697_s9, %s1697_s9 }
  0x23   : > { %p1700_p10 = pnand %p1698_p9, %p1686_p13  ;;  %p1707_p8 = por %p1706_p4, %p1705_p1 }
  0x25   : > { %p1701_p6 = pneg %p1700_p10 }
  0x27   : > { %p1708_p2 = pnand %p1707_p8, %p1701_p6 }
  0x29   : > { %1711 = shalt.err (!%p1708_p2)
}
  0x2a   : > { %s1831_s10 = smov 64   ;;  %s1832_s11 = smov 4  }
  0x2b   : > { %1466 = dma.hbm_to_vmem [thread:$0]  (!%p1920_p11), %s2316_s1, 1024, %s169_s26, [#allocation6], %s1831_s10, %s1831_s10, %s1832_s11  }
  0x2c   : > { %p41_p1 = scmp.ge.s32.totalorder %s39_s28, 2  ;;  %s48_s25 = sadd.s32 1, %s1816_s14 }
  0x2d   : > { %p55_p2 = scmp.ne.s32.totalorder %s1816_s14, %s1812_s13  ;;  %p56_p4 = scmp.eq.s32.totalorder %s1828_s17, 0 }
  0x2e   : > { %s2344_s28 = smov (%p41_p1, %s39_s28), 0  ;;  %p2330_p8 = scmp.ne.s32.totalorder %s2324_s21, 0 }
  0x2f   : > { %p1950_p6 = por %p56_p4, %p55_p2  ;;  %s43_s30 = ssub.s32 %s1824_s16, %s2344_s28 }
  0x30   : > { %p1956_p10 = por %p2330_p8, %p55_p2  ;;  %p1476_p12 = scmp.lt.s32.totalorder %s1828_s17, 2 }
  0x31   : > { %p46_p11 = scmp.eq.s32.totalorder %s43_s30, 0  ;;  %s188_s26 = sand.u32 1, %s1816_s14  }
  0x32   : > { %s1137_s4 = sshll.u32 %s188_s26, 7  ;;  %s1238_s6 = sshll.u32 %s1824_s16, 11 }
  0x33   : > { %s1965_s5 = scalar_select %p46_p11, %s1816_s14, %s48_s25  }
  0x34   : > { %s1971_s9 = scalar_lea.hbm %s2315_s0, %s1238_s6  ;;  %s192_s21 = scalar_lea.vmem [#allocation2], %s1137_s4 }
  0x35   : > { %s201_s18 = sshll.u32 %s192_s21, 4  ;;  %p1977_p13 = pnand %p1476_p12, %p1950_p6  ;;  %s1973_s18 = int_to_ptr.vmem [resolvable:$true] %s201_s18 }
  0x36   : > { %s1981_s25 = scalar_lea.sflag [#allocation3], %s188_s26  ;;  %s1712_s30 = scalar_lea.hbm %s1971_s9, 2048 }
  0x37   : > { %p1713_p0 = scmp.ne.s32.totalorder %s1971_s9, %s1712_s30  ;;  %p1714_p3 = pneg %p1977_p13 }
  0x38   : > { %s1717_s29 = scalar_lea.hbm %s2315_s0, 4096  ;;  %p1718_p9 = scmp.lt.u32.totalorder %s1971_s9, %s2315_s0 }
  0x39   : > { %p1715_p5 = pnand %p1714_p3, %p1713_p0  ;;  %p1719_p1 = scmp.lt.u32.totalorder %s1717_s29, %s1712_s30 }
  0x3a   : > { %p1721_p4 = scmp.lt.u32.totalorder %s1712_s30, %s1971_s9 }
  0x3b   : > { %p1716_p7 = pneg %p1715_p5  ;;  %p1720_p2 = por %p1719_p1, %p1718_p9 }
  0x3d   : > { %p1722_p6 = por %p1721_p4, %p1720_p2 }
  0x3f   : > { %p1723_p8 = pnand %p1722_p6, %p1716_p7 }
  0x41   : > { %1726 = shalt.err (!%p1723_p8)
}
  0x42   : > { %s1727_s26 = scalar_lea.vmem %s1973_s18, 2048  ;;  %s1833_s21 = smov [#allocation2]  }
  0x43   : > { %p1728_p12 = scmp.ne.s32.totalorder %s1973_s18, %s1727_s26  ;;  %s1732_s4 = sshll.u32 %s1833_s21, 4  ;;  %s1733_s4 = int_to_ptr.vmem [resolvable:$false] %s1732_s4 }
  0x44   : > { %s1734_s6 = scalar_lea.vmem %s1733_s4, 4096  ;;  %p1735_p5 = scmp.lt.s32.totalorder %s1973_s18, %s1733_s4 }
  0x45   : > { %p1730_p11 = pnand %p1728_p12, %p1714_p3  ;;  %p1736_p9 = scmp.lt.s32.totalorder %s1734_s6, %s1727_s26 }
  0x47   : > { %p1731_p0 = pneg %p1730_p11  ;;  %p1737_p1 = por %p1736_p9, %p1735_p5 }
  0x49   : > { %p1738_p2 = pnand %p1737_p1, %p1731_p0 }
  0x4b   : > { %1741 = shalt.err (!%p1738_p2)
}
  0x4c   : > { %1470 = dma.hbm_to_vmem [thread:$0]  (!%p1977_p13), %s1971_s9, 2048, %s1973_s18, %s1981_s25, %s1831_s10, %s1831_s10, %s1832_s11  }
  0x4d   : > { %p2333_p3 = scmp.ne.s32.totalorder %s2327_s24, 0 }
  0x4e   : > { %s2015_s30 = sand.u32 (!%p2333_p3), 1, %s1812_s13   ;;  %p2334_p7 = scmp.ne.s32.totalorder (!%p2333_p3), %s2325_s22, 0 }
  0x4f   : > { %213 = sbr.rel (%p2333_p3) target bundleno = 439 (0x1b7), region = 32  ;;  %s1141_s29 = sshll.u32 (!%p2333_p3), %s2015_s30, 7 }
  0x50   : > { %s216_s7 = scalar_lea.sflag (!%p2333_p3), [#allocation3], %s2015_s30  ;;  %s2021_s19 = scalar_lea.vmem (!%p2333_p3), [#allocation2], %s1141_s29 }
  0x56   : > { %1795 = dma.done.wait (%p2334_p7), %s216_s7, 2048  }
  0x57   : > { %1797 = vsyncadd (%p2334_p7), %s216_s7, 4294965248  ;;  %p2335_p13 = scmp.ne.s32.totalorder %s2323_s20, 0 }
  0x59   : > { %1799 = dma.done.wait (%p2335_p13), [#allocation6], 1024  }
  0x5a   : > { %1801 = vsyncadd (%p2335_p13), [#allocation6], 4294966272  ;;  %v1532_v0 = vld [vmem:[#allocation5] sm:$0xff]   ;;  %v1533_v1 = vld [vmem:[#allocation5 + $0x8] sm:$0xff]   ;;  %s2177_s24 = scalar_lea.vmem [#allocation7], %s1141_s29  ;;  %s1271_s10 = sshll.u32 %s1820_s15, 11 }
  0x5b   : > { %1391 = vmatprep.subr.bf16.mxu0 %v1532_v0  ;;  %1439 = vmatprep.subr.bf16.mxu1 %v1532_v0  ;;  %v1534_v2 = vld [vmem:[#allocation5 + $0x10] sm:$0xff]   ;;  %v1535_v3 = vld [vmem:[#allocation5 + $0x18] sm:$0xff]   ;;  %v1540_v4 = vld [vmem:[%s2021_s19] sm:$0xff]   ;;  %s1016_s11 = sshll.u32 %s2177_s24, 4  ;;  %s2261_s15 = scalar_lea.hbm %s2318_s3, %s1271_s10  ;;  %s2263_s11 = int_to_ptr.vmem [resolvable:$true] %s1016_s11 }
  0x5c   : > { %1392 = vmatpush3.bf16.msra.mxu0 %v1532_v0  ;;  %1447 = vmatpush3.bf16.msra.mxu1 %v1532_v0  ;;  %v1541_v5 = vld [vmem:[%s2021_s19 + $0x40] sm:$0xff]   ;;  %v1537_v7 = vld [vmem:[#allocation5 + $0x28] sm:$0xff]   ;;  %v1538_v8 = vld [vmem:[#allocation5 + $0x30] sm:$0xff]   ;;  %s1000_s25 = scalar_lea.sflag [#allocation4], %s2015_s30  ;;  %s1742_s8 = scalar_lea.vmem %s2263_s11, 2048 }
  0x5d   : > { %1393 = vmatprep.subr.bf16.mxu0 %v1533_v1  ;;  %1440 = vmatprep.subr.bf16.mxu1 %v1533_v1  ;;  %v1536_v6 = vld [vmem:[#allocation5 + $0x20] sm:$0xff]   ;;  %v1539_v9 = vld [vmem:[#allocation5 + $0x38] sm:$0xff]   ;;  %v1542_v10 = vld [vmem:[%s2021_s19 + $0x8] sm:$0xff]   ;;  %p1743_p4 = scmp.ne.s32.totalorder %s2263_s11, %s1742_s8  ;;  %s1834_s26 = smov [#allocation7]  }
  0x5e   : > { %1407 = vmatprep.mubr.bf16.mxu0 %v1540_v4  ;;  %1423 = vmatprep.mubr.bf16.mxu1 %v1541_v5  ;;  %v1543_v11 = vld [vmem:[%s2021_s19 + $0x48] sm:$0xff]   ;;  %v1544_v12 = vld [vmem:[%s2021_s19 + $0x10] sm:$0xff]   ;;  %v1546_v14 = vld [vmem:[%s2021_s19 + $0x18] sm:$0xff]   ;;  %s1746_s21 = sshll.u32 %s1834_s26, 4  ;;  %s1747_s21 = int_to_ptr.vmem [resolvable:$false] %s1746_s21 }
  0x5f   : > { %v1545_v13 = vld [vmem:[%s2021_s19 + $0x50] sm:$0xff]   ;;  %v1547_v15 = vld [vmem:[%s2021_s19 + $0x58] sm:$0xff]   ;;  %v1548_v16 = vld [vmem:[%s2021_s19 + $0x20] sm:$0xff]   ;;  %p1744_p6 = pnand %p1743_p4, %p1956_p10  ;;  %s1748_s4 = scalar_lea.vmem %s1747_s21, 4096 }
  0x60   : > { %1394 = vmatpush3.bf16.msra.mxu0 %v1533_v1  ;;  %1448 = vmatpush3.bf16.msra.mxu1 %v1533_v1  ;;  %v1549_v17 = vld [vmem:[%s2021_s19 + $0x60] sm:$0xff]   ;;  %v1550_v18 = vld [vmem:[%s2021_s19 + $0x28] sm:$0xff]   ;;  %v1552_v20 = vld [vmem:[%s2021_s19 + $0x30] sm:$0xff]   ;;  %p1749_p12 = scmp.lt.s32.totalorder %s2263_s11, %s1747_s21  ;;  %p1750_p11 = scmp.lt.s32.totalorder %s1748_s4, %s1742_s8 }
  0x61   : > { %1395 = vmatprep.subr.bf16.mxu0 %v1534_v2  ;;  %1441 = vmatprep.subr.bf16.mxu1 %v1534_v2  ;;  %v1551_v19 = vld [vmem:[%s2021_s19 + $0x68] sm:$0xff]   ;;  %v1553_v21 = vld [vmem:[%s2021_s19 + $0x70] sm:$0xff]   ;;  %v1554_v22 = vld [vmem:[%s2021_s19 + $0x38] sm:$0xff]   ;;  %p1745_p8 = pneg %p1744_p6 }
  0x62   : > { %v1555_v23 = vld [vmem:[%s2021_s19 + $0x78] sm:$0xff]   ;;  %v2050_v24 = vld [vmem:[%s2317_s2] ss:$0 sm:$0xff]  ;;  %p1751_p0 = por %p1750_p11, %p1749_p12 }
  0x64   : > { %1396 = vmatpush3.bf16.msra.mxu0 %v1534_v2  ;;  %1449 = vmatpush3.bf16.msra.mxu1 %v1534_v2  ;;  %p1752_p5 = pnand %p1751_p0, %p1745_p8 }
  0x65   : > { %1397 = vmatprep.subr.bf16.mxu0 %v1535_v3  ;;  %1442 = vmatprep.subr.bf16.mxu1 %v1535_v3 }
  0x68   : > { %1398 = vmatpush3.bf16.msra.mxu0 %v1535_v3  ;;  %1450 = vmatpush3.bf16.msra.mxu1 %v1535_v3 }
  0x69   : > { %1399 = vmatprep.subr.bf16.mxu0 %v1536_v6  ;;  %1443 = vmatprep.subr.bf16.mxu1 %v1536_v6 }
  0x6c   : > { %1400 = vmatpush3.bf16.msra.mxu0 %v1536_v6  ;;  %1451 = vmatpush3.bf16.msra.mxu1 %v1536_v6 }
  0x6d   : > { %1401 = vmatprep.subr.bf16.mxu0 %v1537_v7  ;;  %1444 = vmatprep.subr.bf16.mxu1 %v1537_v7 }
  0x70   : > { %1402 = vmatpush3.bf16.msra.mxu0 %v1537_v7  ;;  %1452 = vmatpush3.bf16.msra.mxu1 %v1537_v7 }
  0x71   : > { %1403 = vmatprep.subr.bf16.mxu0 %v1538_v8  ;;  %1445 = vmatprep.subr.bf16.mxu1 %v1538_v8 }
  0x74   : > { %1404 = vmatpush3.bf16.msra.mxu0 %v1538_v8  ;;  %1453 = vmatpush3.bf16.msra.mxu1 %v1538_v8 }
  0x75   : > { %1405 = vmatprep.subr.bf16.mxu0 %v1539_v9  ;;  %1446 = vmatprep.subr.bf16.mxu1 %v1539_v9 }
  0x78   : > { %1406 = vmatpush3.bf16.msra.mxu0 %v1539_v9  ;;  %1454 = vmatpush3.bf16.msra.mxu1 %v1539_v9 }
  0x7b   : > { %1408 = vmatmul.mubr.bf16.vlgmr.msra.gmra.mrb[0].mxu0 %v1542_v10  ;;  %1424 = vmatmul.mubr.bf16.vlgmr.msra.gmra.mrb[0].mxu1 %v1543_v11 }
  0x7c   : > { %1411 = vmatprep.mubr.bf16.mxu0 %v1544_v12  ;;  %1427 = vmatprep.mubr.bf16.mxu1 %v1545_v13 }
  0x83   : > { %1412 = vmatmul.mubr.bf16.gmra.mrb[4].mxu0 %v1546_v14  ;;  %1428 = vmatmul.mubr.bf16.gmra.mrb[4].mxu1 %v1547_v15 }
  0x84   : > { %1415 = vmatprep.mubr.bf16.mxu0 %v1548_v16  ;;  %1431 = vmatprep.mubr.bf16.mxu1 %v1549_v17 }
  0x8b   : > { %1416 = vmatmul.mubr.bf16.gmra.mrb[8].mxu0 %v1550_v18  ;;  %1432 = vmatmul.mubr.bf16.gmra.mrb[8].mxu1 %v1551_v19 }
  0x8c   : > { %1419 = vmatprep.mubr.bf16.mxu0 %v1552_v20  ;;  %1435 = vmatprep.mubr.bf16.mxu1 %v1553_v21 }
  0x93   : > { %1420 = vmatmul.mubr.bf16.gmra.mrb[12].mxu0 %v1554_v22  ;;  %1436 = vmatmul.mubr.bf16.gmra.mrb[12].mxu1 %v1555_v23 }
 0x14e   : > { %v1409_v25 = vpop.f32.mrb[0].mxu0  ;;  %v1425_v26 = vpop.f32.mrb[0].mxu1 }
 0x14f   : > { %v2053_v27 = vadd.f32 %v1409_v25, %v2050_v24  ;;  %v2056_v28 = vadd.f32 %v1425_v26, %v2050_v24  ;;  %v488_v29 = vpop.f32.mrb[1].mxu0  ;;  %v552_v30 = vpop.f32.mrb[1].mxu1 }
 0x150   : > { %v2059_v31 = vadd.f32 %v2050_v24, %v488_v29  ;;  %v2062_v32 = vadd.f32 %v2050_v24, %v552_v30  ;;  %v1410_v33 = vpop.f32.mrb[2].mxu0  ;;  %v1426_v34 = vpop.f32.mrb[2].mxu1 }
 0x151   : > { %v1171_v35 = vmul.f32 -1.442695, %v2053_v27  ;;  %v1187_v36 = vmul.f32 -1.442695, %v2056_v28  ;;  %v2067_v37 = vadd.f32 %v1410_v33, %v2050_v24  ;;  %v2070_v38 = vadd.f32 %v1426_v34, %v2050_v24  ;;  %v491_v39 = vpop.f32.mrb[3].mxu0  ;;  %v555_v40 = vpop.f32.mrb[3].mxu1 }
 0x152   : > { %v1169_v41 = vmul.f32 -1.442695, %v2059_v31  ;;  %v1185_v42 = vmul.f32 -1.442695, %v2062_v32  ;;  %v2075_v43 = vadd.f32 %v2050_v24, %v491_v39  ;;  %v2078_v44 = vadd.f32 %v2050_v24, %v555_v40 }
 0x153   : > { %1556 = vpow2.f32 %v1171_v35  ;;  %v1172_v45 = vmul.f32 -1.442695, %v2067_v37  ;;  %v1188_v46 = vmul.f32 -1.442695, %v2070_v38 }
 0x154   : > { %1558 = vpow2.f32 %v1187_v36  ;;  %v1170_v47 = vmul.f32 -1.442695, %v2075_v43  ;;  %v1186_v48 = vmul.f32 -1.442695, %v2078_v44 }
 0x155   : > { %1560 = vpow2.f32 %v1169_v41 }
 0x156   : > { %1562 = vpow2.f32 %v1185_v42  ;;  %v1413_v49 = vpop.f32.mrb[4].mxu0  ;;  %v1429_v50 = vpop.f32.mrb[4].mxu1 }
 0x157   : > { %1564 = vpow2.f32 %v1172_v45  ;;  %v2085_v51 = vadd.f32 %v1413_v49, %v2050_v24  ;;  %v2088_v52 = vadd.f32 %v1429_v50, %v2050_v24  ;;  %v504_v53 = vpop.f32.mrb[5].mxu0  ;;  %v568_v54 = vpop.f32.mrb[5].mxu1 }
 0x158   : > { %1566 = vpow2.f32 %v1188_v46  ;;  %v2091_v55 = vadd.f32 %v2050_v24, %v504_v53  ;;  %v2094_v56 = vadd.f32 %v2050_v24, %v568_v54  ;;  %v1414_v57 = vpop.f32.mrb[6].mxu0  ;;  %v1430_v58 = vpop.f32.mrb[6].mxu1 }
 0x159   : > { %1568 = vpow2.f32 %v1170_v47  ;;  %v1175_v59 = vmul.f32 -1.442695, %v2085_v51  ;;  %v1191_v60 = vmul.f32 -1.442695, %v2088_v52  ;;  %v2099_v61 = vadd.f32 %v1414_v57, %v2050_v24  ;;  %v507_v62 = vpop.f32.mrb[7].mxu0  ;;  %v571_v63 = vpop.f32.mrb[7].mxu1 }
 0x15a   : > { %1570 = vpow2.f32 %v1186_v48  ;;  %v1173_v0 = vmul.f32 -1.442695, %v2091_v55  ;;  %v1189_v1 = vmul.f32 -1.442695, %v2094_v56  ;;  %v2105_v21 = vadd.f32 %v1430_v58, %v2050_v24 }
 0x15b   : > { %1572 = vpow2.f32 %v1175_v59  ;;  %v1176_v2 = vmul.f32 -1.442695, %v2099_v61  ;;  %v2108_v26 = vadd.f32 %v2050_v24, %v507_v62  ;;  %v2112_v40 = vadd.f32 %v2050_v24, %v571_v63 }
 0x15c   : > { %1574 = vpow2.f32 %v1191_v60  ;;  %v1192_v39 = vmul.f32 -1.442695, %v2105_v21 }
 0x15d   : > { %v1557_v3 = vpop.eup %1556  ;;  %1576 = vpow2.f32 %v1173_v0  ;;  %v1174_v46 = vmul.f32 -1.442695, %v2108_v26 }
 0x15e   : > { %v1559_v4 = vpop.eup %1558  ;;  %v713_v5 = vadd.f32 1.0, %v1557_v3  ;;  %1578 = vpow2.f32 %v1189_v1  ;;  %v1417_v6 = vpop.f32.mrb[8].mxu0 }
 0x15f   : > { %v1433_v7 = vpop.f32.mrb[8].mxu1  ;;  %v1561_v8 = vpop.eup %1560  ;;  %v729_v9 = vadd.f32 1.0, %v1559_v4  ;;  %1580 = vpow2.f32 %v1176_v2  ;;  %v2116_v47 = vadd.f32 %v1417_v6, %v2050_v24 }
 0x160   : > { %v520_v10 = vpop.f32.mrb[9].mxu0  ;;  %v584_v11 = vpop.f32.mrb[9].mxu1  ;;  %1582 = vrcp.f32 %v713_v5  ;;  %v711_v13 = vadd.f32 1.0, %v1561_v8  ;;  %v2121_v54 = vadd.f32 %v1433_v7, %v2050_v24 }
 0x161   : > { %v1563_v12 = vpop.eup %1562  ;;  %v1418_v14 = vpop.f32.mrb[10].mxu0  ;;  %1584 = vrcp.f32 %v729_v9  ;;  %v2124_v57 = vadd.f32 %v2050_v24, %v520_v10  ;;  %v2131_v63 = vadd.f32 %v2050_v24, %v584_v11  ;;  %v1190_v9 = vmul.f32 -1.442695, %v2112_v40 }
 0x162   : > { %v1434_v15 = vpop.f32.mrb[10].mxu1  ;;  %v1565_v16 = vpop.eup %1564  ;;  %v727_v17 = vadd.f32 1.0, %v1563_v12  ;;  %1586 = vrcp.f32 %v711_v13  ;;  %v2134_v0 = vadd.f32 %v1418_v14, %v2050_v24  ;;  %v1179_v11 = vmul.f32 -1.442695, %v2116_v47 }
 0x163   : > { %v523_v18 = vpop.f32.mrb[11].mxu0  ;;  %v1567_v19 = vpop.eup %1566  ;;  %v714_v20 = vadd.f32 1.0, %v1565_v16  ;;  %v2141_v5 = vadd.f32 %v1434_v15, %v2050_v24  ;;  %v1195_v12 = vmul.f32 -1.442695, %v2121_v54  ;;  %v1177_v14 = vmul.f32 -1.442695, %v2124_v57 }
 0x164   : > { %v587_v22 = vpop.f32.mrb[11].mxu1  ;;  %v1569_v23 = vpop.eup %1568  ;;  %1588 = vrcp.f32 %v727_v17  ;;  %v730_v25 = vadd.f32 1.0, %v1567_v19  ;;  %v2144_v6 = vadd.f32 %v2050_v24, %v523_v18  ;;  %v1193_v15 = vmul.f32 -1.442695, %v2131_v63 }
 0x165   : > { %v1571_v29 = vpop.eup %1570  ;;  %1590 = vrcp.f32 %v714_v20  ;;  %v712_v30 = vadd.f32 1.0, %v1569_v23  ;;  %v2154_v16 = vadd.f32 %v2050_v24, %v587_v22  ;;  %v1180_v18 = vmul.f32 -1.442695, %v2134_v0 }
 0x166   : > { %v1573_v33 = vpop.eup %1572  ;;  %1592 = vrcp.f32 %v730_v25  ;;  %v728_v34 = vadd.f32 1.0, %v1571_v29  ;;  %v1421_v41 = vpop.f32.mrb[12].mxu0  ;;  %v1196_v19 = vmul.f32 -1.442695, %v2141_v5  ;;  %v1178_v20 = vmul.f32 -1.442695, %v2144_v6 }
 0x167   : > { %v1575_v35 = vpop.eup %1574  ;;  %1594 = vrcp.f32 %v712_v30  ;;  %v717_v36 = vadd.f32 1.0, %v1573_v33  ;;  %v1437_v48 = vpop.f32.mrb[12].mxu1  ;;  %v2162_v30 = vadd.f32 %v1421_v41, %v2050_v24 }
 0x168   : > { %v1577_v42 = vpop.eup %1576  ;;  %1596 = vrcp.f32 %v728_v34  ;;  %v733_v45 = vadd.f32 1.0, %v1575_v35  ;;  %v2118_v49 = vpop.f32.mrb[13].mxu0  ;;  %v2167_v35 = vadd.f32 %v1437_v48, %v2050_v24 }
 0x169   : > { %v1579_v50 = vpop.eup %1578  ;;  %1598 = vrcp.f32 %v717_v36  ;;  %v715_v53 = vadd.f32 1.0, %v1577_v42  ;;  %v2126_v58 = vpop.f32.mrb[13].mxu1 }
 0x16a   : > { %v2128_v59 = vpop.f32.mrb[14].mxu0  ;;  %v1581_v60 = vpop.eup %1580  ;;  %1600 = vrcp.f32 %v733_v45  ;;  %v731_v62 = vadd.f32 1.0, %v1579_v50  ;;  %v1199_v50 = vmul.f32 -1.442695, %v2167_v35 }
 0x16b   : > { %v2136_v1 = vpop.f32.mrb[14].mxu1  ;;  %v2138_v2 = vpop.f32.mrb[15].mxu0  ;;  %1602 = vrcp.f32 %v715_v53  ;;  %v718_v4 = vadd.f32 1.0, %v1581_v60 }
 0x16c   : > { %v1583_v3 = vpop.eup %1582  ;;  %v2146_v7 = vpop.f32.mrb[15].mxu1  ;;  %1604 = vrcp.f32 %v731_v62 }
 0x16d   : > { %v1585_v8 = vpop.eup %1584  ;;  %1606 = vrcp.f32 %v718_v4  ;;  %v809_v25 = vmul.f32 %v1583_v3, %v2053_v27 }
 0x16e   : > { %v1587_v10 = vpop.eup %1586  ;;  %1608 = vpow2.f32 %v1192_v39  ;;  %v825_v22 = vmul.f32 %v1585_v8, %v2056_v28 }
 0x16f   : > { %v1589_v13 = vpop.eup %1588  ;;  %1610 = vpow2.f32 %v1174_v46  ;;  %v807_v39 = vmul.f32 %v1587_v10, %v2059_v31 }
 0x170   : > { %v1591_v17 = vpop.eup %1590  ;;  %1612 = vpow2.f32 %v1190_v9  ;;  %v823_v41 = vmul.f32 %v1589_v13, %v2062_v32 }
 0x171   : > { %v1593_v23 = vpop.eup %1592  ;;  %v810_v29 = vmul.f32 %v1591_v17, %v2067_v37  ;;  %1614 = vpow2.f32 %v1179_v11 }
 0x172   : > { %v1595_v33 = vpop.eup %1594  ;;  %v826_v34 = vmul.f32 %v1593_v23, %v2070_v38  ;;  %1616 = vpow2.f32 %v1195_v12  ;;  %v1194_v38 = vmul.f32 -1.442695, %v2154_v16 }
 0x173   : > { %v1597_v36 = vpop.eup %1596  ;;  %v1280_v27 = vpack.c.bf16 %v810_v29, %v809_v25  ;;  %v808_v37 = vmul.f32 %v1595_v33, %v2075_v43  ;;  %1618 = vpow2.f32 %v1177_v14  ;;  %v2195_v29 = vadd.f32 %v2050_v24, %v2118_v49 }
 0x174   : > { %v1599_v42 = vpop.eup %1598  ;;  %v1320_v45 = vpack.c.bf16 %v826_v34, %v825_v22  ;;  %v824_v46 = vmul.f32 %v1597_v36, %v2078_v44  ;;  %1620 = vpow2.f32 %v1193_v15  ;;  %v1183_v44 = vmul.f32 -1.442695, %v2162_v30 }
 0x175   : > { %v2173_v28 = vpop.eup %1600  ;;  %1352 = vst [vmem:[%s2177_s24 + $0x8] sm:$0xff] %v1280_v27   ;;  %v1275_v31 = vpack.c.bf16 %v808_v37, %v807_v39  ;;  %1622 = vpow2.f32 %v1180_v18  ;;  %v813_v62 = vmul.f32 %v1599_v42, %v2085_v51  ;;  %v2199_v34 = vadd.f32 %v2050_v24, %v2126_v58 }
 0x176   : > { %v2181_v43 = vpop.eup %1602  ;;  %1360 = vst [vmem:[%s2177_s24 + $0x48] sm:$0xff] %v1320_v45   ;;  %v1315_v32 = vpack.c.bf16 %v824_v46, %v823_v41  ;;  %1624 = vpow2.f32 %v1196_v19  ;;  %v2203_v27 = vadd.f32 %v2128_v59, %v2050_v24  ;;  %v2207_v49 = vadd.f32 %v2136_v1, %v2050_v24 }
 0x177   : > { %v2185_v48 = vpop.eup %1604  ;;  %1276 = vst [vmem:[%s2177_s24] sm:$0xff] %v1275_v31   ;;  %1626 = vpow2.f32 %v1178_v20  ;;  %v2211_v41 = vadd.f32 %v2050_v24, %v2138_v2  ;;  %v1181_v45 = vmul.f32 -1.442695, %v2195_v29  ;;  %v1197_v59 = vmul.f32 -1.442695, %v2199_v34 }
 0x178   : > { %v1607_v53 = vpop.eup %1606  ;;  %1359 = vst [vmem:[%s2177_s24 + $0x40] sm:$0xff] %v1315_v32   ;;  %1628 = vpow2.f32 %v1194_v38  ;;  %v2217_v31 = vadd.f32 %v2050_v24, %v2146_v7  ;;  %v829_v1 = vmul.f32 %v2173_v28, %v2088_v52  ;;  %v1184_v2 = vmul.f32 -1.442695, %v2203_v27 }
 0x179   : > { %v1609_v60 = vpop.eup %1608  ;;  %v814_v3 = vmul.f32 %v1607_v53, %v2099_v61  ;;  %1630 = vpow2.f32 %v1183_v44  ;;  %v1182_v24 = vmul.f32 -1.442695, %v2211_v41  ;;  %v827_v52 = vmul.f32 %v2185_v48, %v2094_v56 }
 0x17a   : > { %v1611_v4 = vpop.eup %1610  ;;  %v734_v8 = vadd.f32 1.0, %v1609_v60  ;;  %1632 = vpow2.f32 %v1199_v50  ;;  %v811_v50 = vmul.f32 %v2181_v43, %v2091_v55  ;;  %v1200_v60 = vmul.f32 -1.442695, %v2207_v49 }
 0x17b   : > { %v1613_v9 = vpop.eup %1612  ;;  %v1290_v10 = vpack.c.bf16 %v814_v3, %v813_v62  ;;  %v716_v11 = vadd.f32 1.0, %v1611_v4  ;;  %v1198_v55 = vmul.f32 -1.442695, %v2217_v31 }
 0x17c   : > { %v1615_v12 = vpop.eup %1614  ;;  %1634 = vrcp.f32 %v734_v8  ;;  %v732_v13 = vadd.f32 1.0, %v1613_v9 }
 0x17d   : > { %v1617_v14 = vpop.eup %1616  ;;  %1354 = vst [vmem:[%s2177_s24 + $0x18] sm:$0xff] %v1290_v10   ;;  %1636 = vrcp.f32 %v716_v11  ;;  %v721_v15 = vadd.f32 1.0, %v1615_v12 }
 0x17e   : > { %v1619_v17 = vpop.eup %1618  ;;  %1638 = vrcp.f32 %v732_v13  ;;  %v737_v51 = vadd.f32 1.0, %v1617_v14 }
 0x17f   : > { %v1621_v18 = vpop.eup %1620  ;;  %1640 = vrcp.f32 %v721_v15  ;;  %v719_v61 = vadd.f32 1.0, %v1619_v17 }
 0x180   : > { %v1623_v19 = vpop.eup %1622  ;;  %1642 = vrcp.f32 %v737_v51  ;;  %v735_v20 = vadd.f32 1.0, %v1621_v18 }
 0x181   : > { %v1625_v23 = vpop.eup %1624  ;;  %1644 = vrcp.f32 %v719_v61  ;;  %v722_v25 = vadd.f32 1.0, %v1623_v19 }
 0x182   : > { %v1627_v33 = vpop.eup %1626  ;;  %1646 = vrcp.f32 %v735_v20  ;;  %v738_v22 = vadd.f32 1.0, %v1625_v23 }
 0x183   : > { %v1629_v36 = vpop.eup %1628  ;;  %1648 = vrcp.f32 %v722_v25  ;;  %v720_v39 = vadd.f32 1.0, %v1627_v33 }
 0x184   : > { %v1631_v37 = vpop.eup %1630  ;;  %1650 = vrcp.f32 %v738_v22  ;;  %v736_v42 = vadd.f32 1.0, %v1629_v36 }
 0x185   : > { %v1633_v58 = vpop.eup %1632  ;;  %1652 = vrcp.f32 %v720_v39  ;;  %v725_v17 = vadd.f32 1.0, %v1631_v37 }
 0x186   : > { %v1635_v46 = vpop.eup %1634  ;;  %1654 = vrcp.f32 %v736_v42  ;;  %v741_v18 = vadd.f32 1.0, %v1633_v58 }
 0x187   : > { %v1637_v38 = vpop.eup %1636  ;;  %v830_v32 = vmul.f32 %v1635_v46, %v2105_v21  ;;  %1656 = vpow2.f32 %v1181_v45 }
 0x188   : > { %v1639_v44 = vpop.eup %1638  ;;  %v812_v53 = vmul.f32 %v1637_v38, %v2108_v26  ;;  %1658 = vpow2.f32 %v1197_v59 }
 0x189   : > { %v1641_v7 = vpop.eup %1640  ;;  %v1330_v21 = vpack.c.bf16 %v830_v32, %v829_v1  ;;  %v828_v28 = vmul.f32 %v1639_v44, %v2112_v40  ;;  %1660 = vpow2.f32 %v1184_v2 }
 0x18a   : > { %v1643_v62 = vpop.eup %1642  ;;  %v1285_v3 = vpack.c.bf16 %v812_v53, %v811_v50  ;;  %1662 = vpow2.f32 %v1200_v60  ;;  %v817_v40 = vmul.f32 %v1641_v7, %v2116_v47 }
 0x18b   : > { %v1645_v26 = vpop.eup %1644  ;;  %1362 = vst [vmem:[%s2177_s24 + $0x58] sm:$0xff] %v1330_v21   ;;  %v1325_v43 = vpack.c.bf16 %v828_v28, %v827_v52  ;;  %1664 = vpow2.f32 %v1182_v24  ;;  %v833_v10 = vmul.f32 %v1643_v62, %v2121_v54 }
 0x18c   : > { %v1647_v4 = vpop.eup %1646  ;;  %1353 = vst [vmem:[%s2177_s24 + $0x10] sm:$0xff] %v1285_v3   ;;  %1666 = vpow2.f32 %v1198_v55  ;;  %v815_v13 = vmul.f32 %v1645_v26, %v2124_v57 }
 0x18d   : > { %v1649_v8 = vpop.eup %1648  ;;  %1361 = vst [vmem:[%s2177_s24 + $0x50] sm:$0xff] %v1325_v43   ;;  %v831_v47 = vmul.f32 %v1647_v4, %v2131_v63  ;;  %1668 = vrcp.f32 %v725_v17 }
 0x18e   : > { %v1651_v56 = vpop.eup %1650  ;;  %v818_v48 = vmul.f32 %v1649_v8, %v2134_v0  ;;  %1670 = vrcp.f32 %v741_v18 }
 0x18f   : > { %v1653_v9 = vpop.eup %1652  ;;  %v834_v11 = vmul.f32 %v1651_v56, %v2141_v5 }
 0x190   : > { %v1655_v12 = vpop.eup %1654  ;;  %v1300_v14 = vpack.c.bf16 %v818_v48, %v817_v40  ;;  %v816_v15 = vmul.f32 %v1653_v9, %v2144_v6 }
 0x191   : > { %v1340_v51 = vpack.c.bf16 %v834_v11, %v833_v10  ;;  %v832_v0 = vmul.f32 %v1655_v12, %v2154_v16  ;;  %v1657_v54 = vpop.eup %1656 }
 0x192   : > { %1356 = vst [vmem:[%s2177_s24 + $0x28] sm:$0xff] %v1300_v14   ;;  %v1295_v61 = vpack.c.bf16 %v816_v15, %v815_v13  ;;  %v1659_v19 = vpop.eup %1658  ;;  %v723_v57 = vadd.f32 1.0, %v1657_v54 }
 0x193   : > { %1364 = vst [vmem:[%s2177_s24 + $0x68] sm:$0xff] %v1340_v51   ;;  %v1335_v5 = vpack.c.bf16 %v832_v0, %v831_v47  ;;  %v1661_v20 = vpop.eup %1660  ;;  %v739_v6 = vadd.f32 1.0, %v1659_v19 }
 0x194   : > { %1355 = vst [vmem:[%s2177_s24 + $0x20] sm:$0xff] %v1295_v61   ;;  %v1663_v23 = vpop.eup %1662  ;;  %1672 = vrcp.f32 %v723_v57  ;;  %v726_v63 = vadd.f32 1.0, %v1661_v20 }
 0x195   : > { %1363 = vst [vmem:[%s2177_s24 + $0x60] sm:$0xff] %v1335_v5   ;;  %v1665_v25 = vpop.eup %1664  ;;  %1674 = vrcp.f32 %v739_v6  ;;  %v742_v16 = vadd.f32 1.0, %v1663_v23 }
 0x196   : > { %v1667_v33 = vpop.eup %1666  ;;  %1676 = vrcp.f32 %v726_v63  ;;  %v724_v22 = vadd.f32 1.0, %v1665_v25 }
 0x197   : > { %1678 = vrcp.f32 %v742_v16  ;;  %v740_v36 = vadd.f32 1.0, %v1667_v33  ;;  %v1669_v39 = vpop.eup %1668 }
 0x198   : > { %1680 = vrcp.f32 %v724_v22  ;;  %v1671_v37 = vpop.eup %1670  ;;  %v821_v59 = vmul.f32 %v1669_v39, %v2162_v30 }
 0x199   : > { %1682 = vrcp.f32 %v740_v36  ;;  %v837_v32 = vmul.f32 %v1671_v37, %v2167_v35 }
 0x19e   : > { %v1673_v42 = vpop.eup %1672 }
 0x19f   : > { %v1675_v58 = vpop.eup %1674  ;;  %v819_v50 = vmul.f32 %v1673_v42, %v2195_v29 }
 0x1a0   : > { %v1677_v45 = vpop.eup %1676 }
 0x1a1   : > { %v1679_v46 = vpop.eup %1678  ;;  %v822_v38 = vmul.f32 %v1677_v45, %v2203_v27  ;;  %v835_v27 = vmul.f32 %v1675_v58, %v2199_v34 }
 0x1a2   : > { %v1681_v1 = vpop.eup %1680  ;;  %v838_v2 = vmul.f32 %v1679_v46, %v2207_v49 }
 0x1a3   : > { %v1683_v44 = vpop.eup %1682  ;;  %v1310_v53 = vpack.c.bf16 %v822_v38, %v821_v59  ;;  %v820_v30 = vmul.f32 %v1681_v1, %v2211_v41 }
 0x1a4   : > { %v1350_v60 = vpack.c.bf16 %v838_v2, %v837_v32  ;;  %v836_v24 = vmul.f32 %v1683_v44, %v2217_v31 }
 0x1a5   : > { %1358 = vst [vmem:[%s2177_s24 + $0x38] sm:$0xff] %v1310_v53   ;;  %v1305_v35 = vpack.c.bf16 %v820_v30, %v819_v50 }
 0x1a6   : > { %1366 = vst [vmem:[%s2177_s24 + $0x78] sm:$0xff] %v1350_v60   ;;  %v1345_v29 = vpack.c.bf16 %v836_v24, %v835_v27 }
 0x1a7   : > { %1357 = vst [vmem:[%s2177_s24 + $0x30] sm:$0xff] %v1305_v35  }
 0x1a8   : > { %1365 = vst [vmem:[%s2177_s24 + $0x70] sm:$0xff] %v1345_v29  }
 0x1a9   : > { %1755 = shalt.err (!%p1752_p5)
}
 0x1aa   : > { %s1756_s6 = scalar_lea.hbm %s2261_s15, 2048  ;;  %s1760_s19 = scalar_lea.hbm %s2318_s3, 4096 }
 0x1ab   : > { %p1757_p9 = scmp.ne.s32.totalorder %s2261_s15, %s1756_s6  ;;  %p1761_p3 = scmp.lt.u32.totalorder %s2261_s15, %s2318_s3 }
 0x1ac   : > { %p1762_p7 = scmp.lt.u32.totalorder %s1760_s19, %s1756_s6  ;;  %p1764_p4 = scmp.lt.u32.totalorder %s1756_s6, %s2261_s15 }
 0x1ad   : > { %p1758_p1 = pnand %p1757_p9, %p1956_p10 }
 0x1ae   : > { %p1763_p13 = por %p1762_p7, %p1761_p3 }
 0x1af   : > { %p1759_p2 = pneg %p1758_p1 }
 0x1b0   : > { %p1765_p6 = por %p1764_p4, %p1763_p13 }
 0x1b2   : > { %p1766_p8 = pnand %p1765_p6, %p1759_p2 }
 0x1b4   : > { %1769 = shalt.err (!%p1766_p8)
}
 0x1b5   : > { %s1835_s24 = smov 64   ;;  %s1836_s10 = smov 4  }
 0x1b6   : > { %1461 = dma.vmem_to_hbm [thread:$0]  (%p1956_p10), %s2263_s11, 2048, %s2261_s15, %s1000_s25, %s1835_s24, %s1835_s24, %s1836_s10  }
 0x1b7 PF: > { %s1031_s9 = sand.u32 1, %s1808_s12   ;;  %p2336_p12 = scmp.ne.s32.totalorder %s2326_s23, 0 }
 0x1b8   : > { %p2337_p11 = scmp.ge.s32.totalorder %s1828_s17, 2  ;;  %s1032_s18 = scalar_lea.sflag [#allocation4], %s1031_s9 }
 0x1ba   : > { %p1472_p0 = pnand %p2337_p11, %p2336_p12 }
 0x1bc   : > { %1803 = dma.done.wait (!%p1472_p0), %s1032_s18, 2048  }
 0x1bd   : > { %1805 = vsyncadd (!%p1472_p0), %s1032_s18, 4294965248  ;;  %s20_s17 = sadd.s32 1, %s1828_s17   ;;  %s2338_s12 = smov %s1812_s13 }
 0x1be   : > { %p17_p5 = scmp.ge.s32.totalorder %s20_s17, 4   ;;  %s2339_s13 = smov %s1816_s14 }
 0x1bf   : > { %s2340_s14 = smov %s1965_s5  ;;  %s2341_s15 = smov %s1824_s16 }
 0x1c0   : > { %s2342_s16 = smov %s2344_s28  ;;  %19 = sbr.rel (!%p17_p5) target bundleno = 7 (0x7), region = 85 }
 0x1c7   :  { %1037 = vsyncpa [#allocation3], 1 }
 0x1c8   :  { %1039 = vsyncpa [#allocation3 + $0x1], 1 }
 0x1c9   :  { %1040 = vsyncpa [#allocation6], 1 }
 0x1ca   :  { %1041 = vsyncpa [#allocation4], 1 }
 0x1cb   :  { %1043 = vsyncpa [#allocation4 + $0x1], 1 }

</bundles_post_ra>
